<compile_context>
chip_gen: v7x
topology: tpu7x:2x2x1
jax: 0.10.0
libtpu: 0.0.40
codegen_flags: <defaults>
</compile_context>

<pallas_src>
import numpy as np
import jax
import jax.numpy as jnp
from jax.experimental import pallas as pl
from jax.experimental.pallas import tpu as pltpu


def _round_up(x, m):
    return (x + m - 1) // m * m


# ----------------------------------------------------------------------------
# Fused whole-tree Pallas kernel: grid=(1,), in-kernel loop over levels.
# ----------------------------------------------------------------------------
def tree_lstm_kernel(node_ids_ref,                              # SMEM (L*P,) scatter rows
                     x_node_ref, x_child_ref,                   # (L,P,in) , (L,PK,in)
                     sum_sel_ref, child_sel_ref, pool_ref,      # (L,P,S), (L,PK,S), (P,PK)
                     w_ioux_ref, w_iouh_ref, b_iou_ref,         # (in,3m), (m,3m), (1,3m)
                     w_fx_ref, w_fh_ref, b_f_ref,               # (in,m),  (m,m),  (1,m)
                     hinit_ref,                                 # (S,m)
                     h_all_ref, c_all_ref):                     # outputs / resident state (S,m)
    num_levels, P, _ = x_node_ref.shape
    mem = h_all_ref.shape[1]

    # Seed the resident state once (rows not in the tree keep the caller's h).
    h_all_ref[...] = hinit_ref[...]
    c_all_ref[...] = jnp.zeros_like(c_all_ref)

    @pl.loop(0, num_levels)
    def _level(lvl):
        xs = x_node_ref[lvl]          # (P, in_dim)   this level's node inputs
        xc = x_child_ref[lvl]         # (PK, in_dim)  parent input per child slot
        asum = sum_sel_ref[lvl]       # (P, S)        one-hot child-sum matrix
        gsel = child_sel_ref[lvl]     # (PK, S)       one-hot per-child gather

        h_state = h_all_ref[...]      # (S, mem)
        c_state = c_all_ref[...]      # (S, mem)

        # Child gather on the MXU (padded slots select all-zero rows).
        h_sum = jnp.dot(asum, h_state, preferred_element_type=jnp.float32)    # (P, m)
        child_h = jnp.dot(gsel, h_state, preferred_element_type=jnp.float32)  # (PK, m)
        child_c = jnp.dot(gsel, c_state, preferred_element_type=jnp.float32)  # (PK, m)

        # iou path: sum(child_h) computed once per node (not per child).
        iou = (jnp.dot(xs, w_ioux_ref[...], preferred_element_type=jnp.float32)
               + jnp.dot(h_sum, w_iouh_ref[...], preferred_element_type=jnp.float32)
               + b_iou_ref[...])                                               # (P, 3m)
        i = jax.nn.sigmoid(iou[:, :mem])
        o = jax.nn.sigmoid(iou[:, mem:2 * mem])
        u = jnp.tanh(iou[:, 2 * mem:])

        # Forget gates per child slot; padded slots have child_c == 0 so f*c == 0.
        f = jax.nn.sigmoid(
            jnp.dot(child_h, w_fh_ref[...], preferred_element_type=jnp.float32)
            + jnp.dot(xc, w_fx_ref[...], preferred_element_type=jnp.float32)
            + b_f_ref[...])                                                    # (PK, m)
        fc_sum = jnp.dot(pool_ref[...], f * child_c,
                         preferred_element_type=jnp.float32)                  # (P, m)

        c_new = i * u + fc_sum
        h_new = o * jnp.tanh(c_new)

        # Scatter this level's results into the resident state/output rows.
        # Padded node slots target the dedicated dump row (never read back).
        for p in range(P):
            nid = node_ids_ref[lvl * P + p]
            h_all_ref[pl.ds(nid, 1), :] = h_new[p:p + 1, :]
            c_all_ref[pl.ds(nid, 1), :] = c_new[p:p + 1, :]


@jax.jit
def tree_lstm_fused(node_ids, x_node, x_child, sum_sel, child_sel, pool,
                    w_ioux, w_iouh, b_iou, w_fx, w_fh, b_f, h_init):
    num_levels, P, in_dim = x_node.shape
    PK = x_child.shape[1]
    S, mem = h_init.shape

    grid_spec = pltpu.PrefetchScalarGridSpec(
        num_scalar_prefetch=1,                   # flat 1D scatter-row list in SMEM
        grid=(1,),                               # single step; levels loop in-kernel
        in_specs=[
            pl.BlockSpec((num_levels, P, in_dim), lambda i, *_: (0, 0, 0)),
            pl.BlockSpec((num_levels, PK, in_dim), lambda i, *_: (0, 0, 0)),
            pl.BlockSpec((num_levels, P, S), lambda i, *_: (0, 0, 0)),
            pl.BlockSpec((num_levels, PK, S), lambda i, *_: (0, 0, 0)),
            pl.BlockSpec((P, PK), lambda i, *_: (0, 0)),
            pl.BlockSpec(w_ioux.shape, lambda i, *_: (0, 0)),
            pl.BlockSpec(w_iouh.shape, lambda i, *_: (0, 0)),
            pl.BlockSpec(b_iou.shape, lambda i, *_: (0, 0)),
            pl.BlockSpec(w_fx.shape, lambda i, *_: (0, 0)),
            pl.BlockSpec(w_fh.shape, lambda i, *_: (0, 0)),
            pl.BlockSpec(b_f.shape, lambda i, *_: (0, 0)),
            pl.BlockSpec((S, mem), lambda i, *_: (0, 0)),
        ],
        out_specs=[
            pl.BlockSpec((S, mem), lambda i, *_: (0, 0)),   # h_all (resident state)
            pl.BlockSpec((S, mem), lambda i, *_: (0, 0)),   # c_all (resident state)
        ],
    )

    h_all, c_all = pl.pallas_call(
        tree_lstm_kernel,
        out_shape=(jax.ShapeDtypeStruct((S, mem), jnp.float32),
                   jax.ShapeDtypeStruct((S, mem), jnp.float32)),
        grid_spec=grid_spec,
        compiler_params=pltpu.CompilerParams(dimension_semantics=("arbitrary",)),
    )(node_ids, x_node, x_child, sum_sel, child_sel, pool,
      w_ioux, w_iouh, b_iou, w_fx, w_fh, b_f, h_init)
    return h_all, c_all


# ----------------------------------------------------------------------------
# Host-side glue: tree, wavefront schedule, model wrapper.
# ----------------------------------------------------------------------------
class Tree:
    def __init__(self, idx, children=()):
        self.idx = idx
        self.children = list(children)
        self.num_children = len(self.children)
        self.state = None


def build_level_schedule(tree, seq_len, in_dim, max_k, inputs_2d):
    """Wavefront schedule: levels of mutually independent nodes, padded gather /
    scatter tables, and host-pre-gathered input rows."""
    levels = []

    def visit(node):
        d = 0 if node.num_children == 0 else 1 + max(visit(ch) for ch in node.children)
        while len(levels) <= d:
            levels.append([])
        levels[d].append(node)
        return d

    visit(tree)
    num_levels = len(levels)
    P = _round_up(max(len(lv) for lv in levels), 8)   # sublane-aligned level width
    PK = P * max_k
    S = _round_up(seq_len + 2, 8)                     # + zero row + dump row, sublane pad
    dump_row = seq_len + 1                            # row seq_len is the always-zero row

    node_ids = np.full((num_levels, P), dump_row, np.int32)
    x_node = np.zeros((num_levels, P, in_dim), np.float32)
    x_child = np.zeros((num_levels, PK, in_dim), np.float32)
    sum_sel = np.zeros((num_levels, P, S), np.float32)
    child_sel = np.zeros((num_levels, PK, S), np.float32)

    for li, nodes in enumerate(levels):
        assert len(nodes) <= P
        for p, nd in enumerate(nodes):
            assert nd.num_children <= max_k, "increase MAX_K"
            node_ids[li, p] = nd.idx
            x_node[li, p] = inputs_2d[nd.idx]
            for k, ch in enumerate(nd.children):
                sum_sel[li, p, ch.idx] = 1.0
                child_sel[li, p * max_k + k, ch.idx] = 1.0
                x_child[li, p * max_k + k] = inputs_2d[nd.idx]   # parent x, per child slot

    pool = np.zeros((P, PK), np.float32)
    for p in range(P):
        pool[p, p * max_k:(p + 1) * max_k] = 1.0

    return (S,
            jnp.asarray(node_ids.reshape(-1)),
            jnp.asarray(x_node), jnp.asarray(x_child),
            jnp.asarray(sum_sel), jnp.asarray(child_sel), jnp.asarray(pool))


class ChildSumTreeLSTM:
    def __init__(self, in_dim, mem_dim, max_k, key):
        self.in_dim = in_dim
        self.mem_dim = mem_dim
        self.max_k = max_k
        self.params = self._init_params(key)
        p = self.params
        # Biases that apply once-per-node / once-per-child are pre-summed host-side.
        self.b_iou = p["b_ioux"] + p["b_iouh"]    # (1, 3m)
        self.b_f = p["b_fx"] + p["b_fh"]          # (1, m)

    def _init_params(self, key):
        # Deterministic init matching nn.Linear's U(-1/sqrt(fan_in), 1/sqrt(fan_in)).
        def linear(key, fan_in, fan_out):
            kw, kb = jax.random.split(key)
            bound = 1.0 / jnp.sqrt(fan_in)
            w = jax.random.uniform(kw, (fan_in, fan_out), jnp.float32, -bound, bound)
            b = jax.random.uniform(kb, (1, fan_out), jnp.float32, -bound, bound)
            return w, b

        k1, k2, k3, k4 = jax.random.split(key, 4)
        w_ioux, b_ioux = linear(k1, self.in_dim, 3 * self.mem_dim)
        w_iouh, b_iouh = linear(k2, self.mem_dim, 3 * self.mem_dim)
        w_fx, b_fx = linear(k3, self.in_dim, self.mem_dim)
        w_fh, b_fh = linear(k4, self.mem_dim, self.mem_dim)
        return dict(w_ioux=w_ioux, b_ioux=b_ioux, w_iouh=w_iouh, b_iouh=b_iouh,
                    w_fx=w_fx, b_fx=b_fx, w_fh=w_fh, b_fh=b_fh)

    def forward(self, tree, inputs, hiddn_state_mat_all):
        seq_len = inputs.shape[0]
        inputs_2d = np.asarray(inputs).reshape(seq_len, self.in_dim)

        (S, node_ids, x_node, x_child, sum_sel, child_sel, pool) = \
            build_level_schedule(tree, seq_len, self.in_dim, self.max_k, inputs_2d)

        h_init = jnp.zeros((S, self.mem_dim), jnp.float32)
        h_init = h_init.at[:seq_len].set(hiddn_state_mat_all.reshape(seq_len, self.mem_dim))

        p = self.params
        h_all, c_all = tree_lstm_fused(
            node_ids, x_node, x_child, sum_sel, child_sel, pool,
            p["w_ioux"], p["w_iouh"], self.b_iou,
            p["w_fx"], p["w_fh"], self.b_f, h_init)

        h_all = h_all[:seq_len]
        c_all = c_all[:seq_len]

        # Populate per-node .state for parity with the PyTorch module's side effect.
        def set_states(node):
            for ch in node.children:
                set_states(ch)
            node.state = (c_all[node.idx:node.idx + 1], h_all[node.idx:node.idx + 1])
        set_states(tree)

        hiddn_state_mat_all = h_all.reshape(seq_len, 1, self.mem_dim)
        return tree.state[0], tree.state[1], hiddn_state_mat_all


# ----------------------------------------------------------------------------
# Pure-JAX reference (mirrors the PyTorch recursion) for correctness checking.
# ----------------------------------------------------------------------------
def node_forward_ref(x, child_c, child_h, p, mem):
    ch_sum = jnp.sum(child_h, axis=0, keepdims=True)
    iou = x @ p["w_ioux"] + p["b_ioux"] + ch_sum @ p["w_iouh"] + p["b_iouh"]
    i = jax.nn.sigmoid(iou[:, :mem])
    o = jax.nn.sigmoid(iou[:, mem:2 * mem])
    u = jnp.tanh(iou[:, 2 * mem:])
    f = jax.nn.sigmoid(child_h @ p["w_fh"] + p["b_fh"] + x @ p["w_fx"] + p["b_fx"])
    c = i * u + jnp.sum(f * child_c, axis=0, keepdims=True)
    h = o * jnp.tanh(c)
    return c, h


def forward_ref(params, mem, tree, inputs, hid):
    def rec(node, hid):
        for ch in node.children:
            _, _, hid = rec(ch, hid)
        if node.num_children == 0:
            cc = jnp.zeros((1, mem), jnp.float32)
            chh = jnp.zeros((1, mem), jnp.float32)
        else:
            cc = jnp.concatenate([c.ref_state[0] for c in node.children], axis=0)
            chh = jnp.concatenate([c.ref_state[1] for c in node.children], axis=0)
        c, h = node_forward_ref(inputs[node.idx], cc, chh, params, mem)
        node.ref_state = (c, h)
        hid = hid.at[node.idx].set(h)
        return c, h, hid
    return rec(tree, hid)


if __name__ == "__main__":
    IN_DIM, MEM_DIM, SEQ_LEN, MAX_K = 16, 32, 5, 8

    key = jax.random.PRNGKey(0)
    kp, kx = jax.random.split(key)

    model = ChildSumTreeLSTM(IN_DIM, MEM_DIM, MAX_K, kp)

    # inputs[idx] has shape (1, in_dim), matching the PyTorch usage.
    inputs = jax.random.normal(kx, (SEQ_LEN, 1, IN_DIM), jnp.float32)
    hiddn_state_mat_all = jnp.zeros((SEQ_LEN, 1, MEM_DIM), jnp.float32)

    # Small dependency tree: root(idx=2) -> {leaf(0), node(4) -> {leaf(1), leaf(3)}}
    tree = Tree(2, [Tree(0), Tree(4, [Tree(1), Tree(3)])])

    root_c, root_h, hiddn_out = model.forward(tree, inputs, hiddn_state_mat_all)
    jax.block_until_ready((root_c, root_h, hiddn_out))

    # End-to-end check of the fused kernel against the pure-JAX recursion.
    c_ref, h_ref, hid_ref = forward_ref(model.params, MEM_DIM, tree, inputs,
                                        hiddn_state_mat_all)
    assert jnp.allclose(root_c, c_ref, atol=1e-4, rtol=1e-4), "root c mismatch"
    assert jnp.allclose(root_h, h_ref, atol=1e-4, rtol=1e-4), "root h mismatch"
    assert jnp.allclose(hiddn_out, hid_ref, atol=1e-4, rtol=1e-4), "hidden matrix mismatch"

    print("KERNEL_OK")
</pallas_src>

<mosaic_0001>
module attributes {stable_mosaic.version = 11 : i64} {
  func.func @tree_lstm_kernel(%arg0: i32, %arg1: memref<24xi32, #tpu.memory_space<smem>>, %arg2: memref<3x8x16xf32, #tpu.memory_space<vmem>>, %arg3: memref<3x64x16xf32, #tpu.memory_space<vmem>>, %arg4: memref<3x8x8xf32, #tpu.memory_space<vmem>>, %arg5: memref<3x64x8xf32, #tpu.memory_space<vmem>>, %arg6: memref<8x64xf32, #tpu.memory_space<vmem>>, %arg7: memref<16x96xf32, #tpu.memory_space<vmem>>, %arg8: memref<32x96xf32, #tpu.memory_space<vmem>>, %arg9: memref<1x96xf32, #tpu.memory_space<vmem>>, %arg10: memref<16x32xf32, #tpu.memory_space<vmem>>, %arg11: memref<32x32xf32, #tpu.memory_space<vmem>>, %arg12: memref<1x32xf32, #tpu.memory_space<vmem>>, %arg13: memref<8x32xf32, #tpu.memory_space<vmem>>, %arg14: memref<8x32xf32, #tpu.memory_space<vmem>>, %arg15: memref<8x32xf32, #tpu.memory_space<vmem>>) attributes {dimension_semantics = [#tpu.dimension_semantics<arbitrary>], iteration_bounds = array<i64: 1>, scalar_prefetch = 1 : i64, scratch_operands = 0 : i64, tpu.core_type = #tpu.core_type<tc>, window_params = [{pipeline_mode = #tpu.pipeline_mode<synchronous>, transform_indices = @transform_0, window_bounds = array<i64: 3, 8, 16>}, {pipeline_mode = #tpu.pipeline_mode<synchronous>, transform_indices = @transform_1, window_bounds = array<i64: 3, 64, 16>}, {pipeline_mode = #tpu.pipeline_mode<synchronous>, transform_indices = @transform_2, window_bounds = array<i64: 3, 8, 8>}, {pipeline_mode = #tpu.pipeline_mode<synchronous>, transform_indices = @transform_3, window_bounds = array<i64: 3, 64, 8>}, {pipeline_mode = #tpu.pipeline_mode<synchronous>, transform_indices = @transform_4, window_bounds = array<i64: 8, 64>}, {pipeline_mode = #tpu.pipeline_mode<synchronous>, transform_indices = @transform_5, window_bounds = array<i64: 16, 96>}, {pipeline_mode = #tpu.pipeline_mode<synchronous>, transform_indices = @transform_6, window_bounds = array<i64: 32, 96>}, {pipeline_mode = #tpu.pipeline_mode<synchronous>, transform_indices = @transform_7, window_bounds = array<i64: 1, 96>}, {pipeline_mode = #tpu.pipeline_mode<synchronous>, transform_indices = @transform_8, window_bounds = array<i64: 16, 32>}, {pipeline_mode = #tpu.pipeline_mode<synchronous>, transform_indices = @transform_9, window_bounds = array<i64: 32, 32>}, {pipeline_mode = #tpu.pipeline_mode<synchronous>, transform_indices = @transform_10, window_bounds = array<i64: 1, 32>}, {pipeline_mode = #tpu.pipeline_mode<synchronous>, transform_indices = @transform_11, window_bounds = array<i64: 8, 32>}, {pipeline_mode = #tpu.pipeline_mode<synchronous>, transform_indices = @transform_12, window_bounds = array<i64: 8, 32>}, {pipeline_mode = #tpu.pipeline_mode<synchronous>, transform_indices = @transform_13, window_bounds = array<i64: 8, 32>}]} {
    %c0 = arith.constant 0 : index
    %c0_0 = arith.constant 0 : index
    %0 = vector.load %arg13[%c0, %c0_0] : memref<8x32xf32, #tpu.memory_space<vmem>>, vector<8x32xf32>
    %c0_1 = arith.constant 0 : index
    %c0_2 = arith.constant 0 : index
    %1 = vector.load %arg14[%c0_1, %c0_2] : memref<8x32xf32, #tpu.memory_space<vmem>>, vector<8x32xf32>
    tpu.vector_store %arg14[%c0_1, %c0_2], %0 {strides = array<i32>} : memref<8x32xf32, #tpu.memory_space<vmem>>, vector<8x32xf32>,
    %cst = arith.constant 0.000000e+00 : f32
    %2 = vector.broadcast %cst : f32 to vector<8x32xf32>
    %c0_3 = arith.constant 0 : index
    %c0_4 = arith.constant 0 : index
    %3 = vector.load %arg15[%c0_3, %c0_4] : memref<8x32xf32, #tpu.memory_space<vmem>>, vector<8x32xf32>
    tpu.vector_store %arg15[%c0_3, %c0_4], %2 {strides = array<i32>} : memref<8x32xf32, #tpu.memory_space<vmem>>, vector<8x32xf32>,
    %c0_i32 = arith.constant 0 : i32
    %c3_i32 = arith.constant 3 : i32
    %4 = arith.addi %c0_i32, %c3_i32 : i32
    %c1_i32 = arith.constant 1 : i32
    scf.for %arg16 = %c0_i32 to %4 step %c1_i32  : i32 {
      %c1_i32_6 = arith.constant 1 : i32
      %5 = arith.muli %arg16, %c1_i32_6 : i32
      %c0_i32_7 = arith.constant 0 : i32
      %6 = arith.addi %c0_i32_7, %5 : i32
      %7 = arith.index_cast %6 : i32 to index
      %c0_8 = arith.constant 0 : index
      %c0_9 = arith.constant 0 : index
      %8 = vector.load %arg2[%7, %c0_8, %c0_9] : memref<3x8x16xf32, #tpu.memory_space<vmem>>, vector<1x8x16xf32>
      %9 = vector.shape_cast %8 : vector<1x8x16xf32> to vector<8x16xf32>
      %10 = arith.index_cast %6 : i32 to index
      %c0_10 = arith.constant 0 : index
      %c0_11 = arith.constant 0 : index
      %11 = vector.load %arg3[%10, %c0_10, %c0_11] : memref<3x64x16xf32, #tpu.memory_space<vmem>>, vector<1x64x16xf32>
      %12 = vector.shape_cast %11 : vector<1x64x16xf32> to vector<64x16xf32>
      %13 = arith.index_cast %6 : i32 to index
      %c0_12 = arith.constant 0 : index
      %c0_13 = arith.constant 0 : index
      %14 = vector.load %arg4[%13, %c0_12, %c0_13] : memref<3x8x8xf32, #tpu.memory_space<vmem>>, vector<1x8x8xf32>
      %15 = vector.shape_cast %14 : vector<1x8x8xf32> to vector<8x8xf32>
      %16 = arith.index_cast %6 : i32 to index
      %c0_14 = arith.constant 0 : index
      %c0_15 = arith.constant 0 : index
      %17 = vector.load %arg5[%16, %c0_14, %c0_15] : memref<3x64x8xf32, #tpu.memory_space<vmem>>, vector<1x64x8xf32>
      %18 = vector.shape_cast %17 : vector<1x64x8xf32> to vector<64x8xf32>
      %c0_16 = arith.constant 0 : index
      %c0_17 = arith.constant 0 : index
      %19 = vector.load %arg14[%c0_16, %c0_17] : memref<8x32xf32, #tpu.memory_space<vmem>>, vector<8x32xf32>
      %c0_18 = arith.constant 0 : index
      %c0_19 = arith.constant 0 : index
      %20 = vector.load %arg15[%c0_18, %c0_19] : memref<8x32xf32, #tpu.memory_space<vmem>>, vector<8x32xf32>
      %cst_20 = arith.constant dense<0.000000e+00> : vector<8x32xf32>
      %21 = tpu.matmul %15, %19, %cst_20 {dimension_numbers = #tpu.dot_dimension_numbers<[1], [0], [0], [1], [0, 0, 1, 1], [], []>} : vector<8x8xf32>, vector<8x32xf32>, vector<8x32xf32> -> vector<8x32xf32>
      %cst_21 = arith.constant dense<0.000000e+00> : vector<64x32xf32>
      %22 = tpu.matmul %18, %19, %cst_21 {dimension_numbers = #tpu.dot_dimension_numbers<[1], [0], [0], [1], [0, 0, 1, 1], [], []>} : vector<64x8xf32>, vector<8x32xf32>, vector<64x32xf32> -> vector<64x32xf32>
      %cst_22 = arith.constant dense<0.000000e+00> : vector<64x32xf32>
      %23 = tpu.matmul %18, %20, %cst_22 {dimension_numbers = #tpu.dot_dimension_numbers<[1], [0], [0], [1], [0, 0, 1, 1], [], []>} : vector<64x8xf32>, vector<8x32xf32>, vector<64x32xf32> -> vector<64x32xf32>
      %c0_23 = arith.constant 0 : index
      %c0_24 = arith.constant 0 : index
      %24 = vector.load %arg7[%c0_23, %c0_24] : memref<16x96xf32, #tpu.memory_space<vmem>>, vector<16x96xf32>
      %cst_25 = arith.constant dense<0.000000e+00> : vector<8x96xf32>
      %25 = tpu.matmul %9, %24, %cst_25 {dimension_numbers = #tpu.dot_dimension_numbers<[1], [0], [0], [1], [0, 0, 1, 1], [], []>} : vector<8x16xf32>, vector<16x96xf32>, vector<8x96xf32> -> vector<8x96xf32>
      %c0_26 = arith.constant 0 : index
      %c0_27 = arith.constant 0 : index
      %26 = vector.load %arg8[%c0_26, %c0_27] : memref<32x96xf32, #tpu.memory_space<vmem>>, vector<32x96xf32>
      %cst_28 = arith.constant dense<0.000000e+00> : vector<8x96xf32>
      %27 = tpu.matmul %21, %26, %cst_28 {dimension_numbers = #tpu.dot_dimension_numbers<[1], [0], [0], [1], [0, 0, 1, 1], [], []>} : vector<8x32xf32>, vector<32x96xf32>, vector<8x96xf32> -> vector<8x96xf32>
      %28 = arith.addf %25, %27 : vector<8x96xf32>
      %c0_29 = arith.constant 0 : index
      %c0_30 = arith.constant 0 : index
      %29 = vector.load %arg9[%c0_29, %c0_30] : memref<1x96xf32, #tpu.memory_space<vmem>>, vector<1x96xf32>
      %30 = vector.broadcast %29 : vector<1x96xf32> to vector<8x96xf32>
      %31 = arith.addf %28, %30 : vector<8x96xf32>
      %32 = vector.extract_strided_slice %31 {offsets = [0, 0], sizes = [8, 32], strides = [1, 1]} : vector<8x96xf32> to vector<8x32xf32>
      %33 = arith.negf %32 : vector<8x32xf32>
      %34 = math.exp %33 : vector<8x32xf32>
      %cst_31 = arith.constant 1.000000e+00 : f32
      %35 = vector.broadcast %cst_31 : f32 to vector<8x32xf32>
      %36 = arith.addf %35, %34 : vector<8x32xf32>
      %37 = arith.divf %35, %36 : vector<8x32xf32>
      %38 = vector.extract_strided_slice %31 {offsets = [0, 32], sizes = [8, 32], strides = [1, 1]} : vector<8x96xf32> to vector<8x32xf32>
      %39 = arith.negf %38 : vector<8x32xf32>
      %40 = math.exp %39 : vector<8x32xf32>
      %cst_32 = arith.constant 1.000000e+00 : f32
      %41 = vector.broadcast %cst_32 : f32 to vector<8x32xf32>
      %42 = arith.addf %41, %40 : vector<8x32xf32>
      %43 = arith.divf %41, %42 : vector<8x32xf32>
      %44 = vector.extract_strided_slice %31 {offsets = [0, 64], sizes = [8, 32], strides = [1, 1]} : vector<8x96xf32> to vector<8x32xf32>
      %45 = math.tanh %44 : vector<8x32xf32>
      %c0_33 = arith.constant 0 : index
      %c0_34 = arith.constant 0 : index
      %46 = vector.load %arg11[%c0_33, %c0_34] : memref<32x32xf32, #tpu.memory_space<vmem>>, vector<32x32xf32>
      %cst_35 = arith.constant dense<0.000000e+00> : vector<64x32xf32>
      %47 = tpu.matmul %22, %46, %cst_35 {dimension_numbers = #tpu.dot_dimension_numbers<[1], [0], [0], [1], [0, 0, 1, 1], [], []>} : vector<64x32xf32>, vector<32x32xf32>, vector<64x32xf32> -> vector<64x32xf32>
      %c0_36 = arith.constant 0 : index
      %c0_37 = arith.constant 0 : index
      %48 = vector.load %arg10[%c0_36, %c0_37] : memref<16x32xf32, #tpu.memory_space<vmem>>, vector<16x32xf32>
      %cst_38 = arith.constant dense<0.000000e+00> : vector<64x32xf32>
      %49 = tpu.matmul %12, %48, %cst_38 {dimension_numbers = #tpu.dot_dimension_numbers<[1], [0], [0], [1], [0, 0, 1, 1], [], []>} : vector<64x16xf32>, vector<16x32xf32>, vector<64x32xf32> -> vector<64x32xf32>
      %50 = arith.addf %47, %49 : vector<64x32xf32>
      %c0_39 = arith.constant 0 : index
      %c0_40 = arith.constant 0 : index
      %51 = vector.load %arg12[%c0_39, %c0_40] : memref<1x32xf32, #tpu.memory_space<vmem>>, vector<1x32xf32>
      %52 = vector.broadcast %51 : vector<1x32xf32> to vector<64x32xf32>
      %53 = arith.addf %50, %52 : vector<64x32xf32>
      %54 = arith.negf %53 : vector<64x32xf32>
      %55 = math.exp %54 : vector<64x32xf32>
      %cst_41 = arith.constant 1.000000e+00 : f32
      %56 = vector.broadcast %cst_41 : f32 to vector<64x32xf32>
      %57 = arith.addf %56, %55 : vector<64x32xf32>
      %58 = arith.divf %56, %57 : vector<64x32xf32>
      %c0_42 = arith.constant 0 : index
      %c0_43 = arith.constant 0 : index
      %59 = vector.load %arg6[%c0_42, %c0_43] : memref<8x64xf32, #tpu.memory_space<vmem>>, vector<8x64xf32>
      %60 = arith.mulf %58, %23 : vector<64x32xf32>
      %cst_44 = arith.constant dense<0.000000e+00> : vector<8x32xf32>
      %61 = tpu.matmul %59, %60, %cst_44 {dimension_numbers = #tpu.dot_dimension_numbers<[1], [0], [0], [1], [0, 0, 1, 1], [], []>} : vector<8x64xf32>, vector<64x32xf32>, vector<8x32xf32> -> vector<8x32xf32>
      %62 = arith.mulf %37, %45 : vector<8x32xf32>
      %63 = arith.addf %62, %61 : vector<8x32xf32>
      %64 = math.tanh %63 : vector<8x32xf32>
      %65 = arith.mulf %43, %64 : vector<8x32xf32>
      %c8_i32 = arith.constant 8 : i32
      %66 = arith.muli %6, %c8_i32 : i32
      %c0_i32_45 = arith.constant 0 : i32
      %67 = arith.addi %66, %c0_i32_45 : i32
      %68 = arith.index_cast %67 : i32 to index
      %69 = memref.load %arg1[%68] : memref<24xi32, #tpu.memory_space<smem>>
      %70 = vector.extract_strided_slice %65 {offsets = [0, 0], sizes = [1, 32], strides = [1, 1]} : vector<8x32xf32> to vector<1x32xf32>
      %71 = arith.index_cast %69 : i32 to index
      %c0_46 = arith.constant 0 : index
      %72 = vector.load %arg14[%71, %c0_46] : memref<8x32xf32, #tpu.memory_space<vmem>>, vector<1x32xf32>
      tpu.vector_store %arg14[%71, %c0_46], %70 {strides = array<i32>} : memref<8x32xf32, #tpu.memory_space<vmem>>, vector<1x32xf32>,
      %73 = vector.extract_strided_slice %63 {offsets = [0, 0], sizes = [1, 32], strides = [1, 1]} : vector<8x32xf32> to vector<1x32xf32>
      %74 = arith.index_cast %69 : i32 to index
      %c0_47 = arith.constant 0 : index
      %75 = vector.load %arg15[%74, %c0_47] : memref<8x32xf32, #tpu.memory_space<vmem>>, vector<1x32xf32>
      tpu.vector_store %arg15[%74, %c0_47], %73 {strides = array<i32>} : memref<8x32xf32, #tpu.memory_space<vmem>>, vector<1x32xf32>,
      %c8_i32_48 = arith.constant 8 : i32
      %76 = arith.muli %6, %c8_i32_48 : i32
      %c1_i32_49 = arith.constant 1 : i32
      %77 = arith.addi %76, %c1_i32_49 : i32
      %78 = arith.index_cast %77 : i32 to index
      %79 = memref.load %arg1[%78] : memref<24xi32, #tpu.memory_space<smem>>
      %80 = vector.extract_strided_slice %65 {offsets = [1, 0], sizes = [1, 32], strides = [1, 1]} : vector<8x32xf32> to vector<1x32xf32>
      %81 = arith.index_cast %79 : i32 to index
      %c0_50 = arith.constant 0 : index
      %82 = vector.load %arg14[%81, %c0_50] : memref<8x32xf32, #tpu.memory_space<vmem>>, vector<1x32xf32>
      tpu.vector_store %arg14[%81, %c0_50], %80 {strides = array<i32>} : memref<8x32xf32, #tpu.memory_space<vmem>>, vector<1x32xf32>,
      %83 = vector.extract_strided_slice %63 {offsets = [1, 0], sizes = [1, 32], strides = [1, 1]} : vector<8x32xf32> to vector<1x32xf32>
      %84 = arith.index_cast %79 : i32 to index
      %c0_51 = arith.constant 0 : index
      %85 = vector.load %arg15[%84, %c0_51] : memref<8x32xf32, #tpu.memory_space<vmem>>, vector<1x32xf32>
      tpu.vector_store %arg15[%84, %c0_51], %83 {strides = array<i32>} : memref<8x32xf32, #tpu.memory_space<vmem>>, vector<1x32xf32>,
      %c8_i32_52 = arith.constant 8 : i32
      %86 = arith.muli %6, %c8_i32_52 : i32
      %c2_i32 = arith.constant 2 : i32
      %87 = arith.addi %86, %c2_i32 : i32
      %88 = arith.index_cast %87 : i32 to index
      %89 = memref.load %arg1[%88] : memref<24xi32, #tpu.memory_space<smem>>
      %90 = vector.extract_strided_slice %65 {offsets = [2, 0], sizes = [1, 32], strides = [1, 1]} : vector<8x32xf32> to vector<1x32xf32>
      %91 = arith.index_cast %89 : i32 to index
      %c0_53 = arith.constant 0 : index
      %92 = vector.load %arg14[%91, %c0_53] : memref<8x32xf32, #tpu.memory_space<vmem>>, vector<1x32xf32>
      tpu.vector_store %arg14[%91, %c0_53], %90 {strides = array<i32>} : memref<8x32xf32, #tpu.memory_space<vmem>>, vector<1x32xf32>,
      %93 = vector.extract_strided_slice %63 {offsets = [2, 0], sizes = [1, 32], strides = [1, 1]} : vector<8x32xf32> to vector<1x32xf32>
      %94 = arith.index_cast %89 : i32 to index
      %c0_54 = arith.constant 0 : index
      %95 = vector.load %arg15[%94, %c0_54] : memref<8x32xf32, #tpu.memory_space<vmem>>, vector<1x32xf32>
      tpu.vector_store %arg15[%94, %c0_54], %93 {strides = array<i32>} : memref<8x32xf32, #tpu.memory_space<vmem>>, vector<1x32xf32>,
      %c8_i32_55 = arith.constant 8 : i32
      %96 = arith.muli %6, %c8_i32_55 : i32
      %c3_i32_56 = arith.constant 3 : i32
      %97 = arith.addi %96, %c3_i32_56 : i32
      %98 = arith.index_cast %97 : i32 to index
      %99 = memref.load %arg1[%98] : memref<24xi32, #tpu.memory_space<smem>>
      %100 = vector.extract_strided_slice %65 {offsets = [3, 0], sizes = [1, 32], strides = [1, 1]} : vector<8x32xf32> to vector<1x32xf32>
      %101 = arith.index_cast %99 : i32 to index
      %c0_57 = arith.constant 0 : index
      %102 = vector.load %arg14[%101, %c0_57] : memref<8x32xf32, #tpu.memory_space<vmem>>, vector<1x32xf32>
      tpu.vector_store %arg14[%101, %c0_57], %100 {strides = array<i32>} : memref<8x32xf32, #tpu.memory_space<vmem>>, vector<1x32xf32>,
      %103 = vector.extract_strided_slice %63 {offsets = [3, 0], sizes = [1, 32], strides = [1, 1]} : vector<8x32xf32> to vector<1x32xf32>
      %104 = arith.index_cast %99 : i32 to index
      %c0_58 = arith.constant 0 : index
      %105 = vector.load %arg15[%104, %c0_58] : memref<8x32xf32, #tpu.memory_space<vmem>>, vector<1x32xf32>
      tpu.vector_store %arg15[%104, %c0_58], %103 {strides = array<i32>} : memref<8x32xf32, #tpu.memory_space<vmem>>, vector<1x32xf32>,
      %c8_i32_59 = arith.constant 8 : i32
      %106 = arith.muli %6, %c8_i32_59 : i32
      %c4_i32 = arith.constant 4 : i32
      %107 = arith.addi %106, %c4_i32 : i32
      %108 = arith.index_cast %107 : i32 to index
      %109 = memref.load %arg1[%108] : memref<24xi32, #tpu.memory_space<smem>>
      %110 = vector.extract_strided_slice %65 {offsets = [4, 0], sizes = [1, 32], strides = [1, 1]} : vector<8x32xf32> to vector<1x32xf32>
      %111 = arith.index_cast %109 : i32 to index
      %c0_60 = arith.constant 0 : index
      %112 = vector.load %arg14[%111, %c0_60] : memref<8x32xf32, #tpu.memory_space<vmem>>, vector<1x32xf32>
      tpu.vector_store %arg14[%111, %c0_60], %110 {strides = array<i32>} : memref<8x32xf32, #tpu.memory_space<vmem>>, vector<1x32xf32>,
      %113 = vector.extract_strided_slice %63 {offsets = [4, 0], sizes = [1, 32], strides = [1, 1]} : vector<8x32xf32> to vector<1x32xf32>
      %114 = arith.index_cast %109 : i32 to index
      %c0_61 = arith.constant 0 : index
      %115 = vector.load %arg15[%114, %c0_61] : memref<8x32xf32, #tpu.memory_space<vmem>>, vector<1x32xf32>
      tpu.vector_store %arg15[%114, %c0_61], %113 {strides = array<i32>} : memref<8x32xf32, #tpu.memory_space<vmem>>, vector<1x32xf32>,
      %c8_i32_62 = arith.constant 8 : i32
      %116 = arith.muli %6, %c8_i32_62 : i32
      %c5_i32 = arith.constant 5 : i32
      %117 = arith.addi %116, %c5_i32 : i32
      %118 = arith.index_cast %117 : i32 to index
      %119 = memref.load %arg1[%118] : memref<24xi32, #tpu.memory_space<smem>>
      %120 = vector.extract_strided_slice %65 {offsets = [5, 0], sizes = [1, 32], strides = [1, 1]} : vector<8x32xf32> to vector<1x32xf32>
      %121 = arith.index_cast %119 : i32 to index
      %c0_63 = arith.constant 0 : index
      %122 = vector.load %arg14[%121, %c0_63] : memref<8x32xf32, #tpu.memory_space<vmem>>, vector<1x32xf32>
      tpu.vector_store %arg14[%121, %c0_63], %120 {strides = array<i32>} : memref<8x32xf32, #tpu.memory_space<vmem>>, vector<1x32xf32>,
      %123 = vector.extract_strided_slice %63 {offsets = [5, 0], sizes = [1, 32], strides = [1, 1]} : vector<8x32xf32> to vector<1x32xf32>
      %124 = arith.index_cast %119 : i32 to index
      %c0_64 = arith.constant 0 : index
      %125 = vector.load %arg15[%124, %c0_64] : memref<8x32xf32, #tpu.memory_space<vmem>>, vector<1x32xf32>
      tpu.vector_store %arg15[%124, %c0_64], %123 {strides = array<i32>} : memref<8x32xf32, #tpu.memory_space<vmem>>, vector<1x32xf32>,
      %c8_i32_65 = arith.constant 8 : i32
      %126 = arith.muli %6, %c8_i32_65 : i32
      %c6_i32 = arith.constant 6 : i32
      %127 = arith.addi %126, %c6_i32 : i32
      %128 = arith.index_cast %127 : i32 to index
      %129 = memref.load %arg1[%128] : memref<24xi32, #tpu.memory_space<smem>>
      %130 = vector.extract_strided_slice %65 {offsets = [6, 0], sizes = [1, 32], strides = [1, 1]} : vector<8x32xf32> to vector<1x32xf32>
      %131 = arith.index_cast %129 : i32 to index
      %c0_66 = arith.constant 0 : index
      %132 = vector.load %arg14[%131, %c0_66] : memref<8x32xf32, #tpu.memory_space<vmem>>, vector<1x32xf32>
      tpu.vector_store %arg14[%131, %c0_66], %130 {strides = array<i32>} : memref<8x32xf32, #tpu.memory_space<vmem>>, vector<1x32xf32>,
      %133 = vector.extract_strided_slice %63 {offsets = [6, 0], sizes = [1, 32], strides = [1, 1]} : vector<8x32xf32> to vector<1x32xf32>
      %134 = arith.index_cast %129 : i32 to index
      %c0_67 = arith.constant 0 : index
      %135 = vector.load %arg15[%134, %c0_67] : memref<8x32xf32, #tpu.memory_space<vmem>>, vector<1x32xf32>
      tpu.vector_store %arg15[%134, %c0_67], %133 {strides = array<i32>} : memref<8x32xf32, #tpu.memory_space<vmem>>, vector<1x32xf32>,
      %c8_i32_68 = arith.constant 8 : i32
      %136 = arith.muli %6, %c8_i32_68 : i32
      %c7_i32 = arith.constant 7 : i32
      %137 = arith.addi %136, %c7_i32 : i32
      %138 = arith.index_cast %137 : i32 to index
      %139 = memref.load %arg1[%138] : memref<24xi32, #tpu.memory_space<smem>>
      %140 = vector.extract_strided_slice %65 {offsets = [7, 0], sizes = [1, 32], strides = [1, 1]} : vector<8x32xf32> to vector<1x32xf32>
      %141 = arith.index_cast %139 : i32 to index
      %c0_69 = arith.constant 0 : index
      %142 = vector.load %arg14[%141, %c0_69] : memref<8x32xf32, #tpu.memory_space<vmem>>, vector<1x32xf32>
      tpu.vector_store %arg14[%141, %c0_69], %140 {strides = array<i32>} : memref<8x32xf32, #tpu.memory_space<vmem>>, vector<1x32xf32>,
      %143 = vector.extract_strided_slice %63 {offsets = [7, 0], sizes = [1, 32], strides = [1, 1]} : vector<8x32xf32> to vector<1x32xf32>
      %144 = arith.index_cast %139 : i32 to index
      %c0_70 = arith.constant 0 : index
      %145 = vector.load %arg15[%144, %c0_70] : memref<8x32xf32, #tpu.memory_space<vmem>>, vector<1x32xf32>
      tpu.vector_store %arg15[%144, %c0_70], %143 {strides = array<i32>} : memref<8x32xf32, #tpu.memory_space<vmem>>, vector<1x32xf32>,
    }
    %c3_i32_5 = arith.constant 3 : i32
    return
  }
  func.func @transform_0(%arg0: i32, %arg1: memref<24xi32, #tpu.memory_space<smem>>) -> (i32, i32, i32) {
    %c0_i32 = arith.constant 0 : i32
    %c0_i32_0 = arith.constant 0 : i32
    %c0_i32_1 = arith.constant 0 : i32
    %c0_i32_2 = arith.constant 0 : i32
    return %c0_i32, %c0_i32_0, %c0_i32_1 : i32, i32, i32
  }
  func.func @transform_1(%arg0: i32, %arg1: memref<24xi32, #tpu.memory_space<smem>>) -> (i32, i32, i32) {
    %c0_i32 = arith.constant 0 : i32
    %c0_i32_0 = arith.constant 0 : i32
    %c0_i32_1 = arith.constant 0 : i32
    %c0_i32_2 = arith.constant 0 : i32
    return %c0_i32, %c0_i32_0, %c0_i32_1 : i32, i32, i32
  }
  func.func @transform_2(%arg0: i32, %arg1: memref<24xi32, #tpu.memory_space<smem>>) -> (i32, i32, i32) {
    %c0_i32 = arith.constant 0 : i32
    %c0_i32_0 = arith.constant 0 : i32
    %c0_i32_1 = arith.constant 0 : i32
    %c0_i32_2 = arith.constant 0 : i32
    return %c0_i32, %c0_i32_0, %c0_i32_1 : i32, i32, i32
  }
  func.func @transform_3(%arg0: i32, %arg1: memref<24xi32, #tpu.memory_space<smem>>) -> (i32, i32, i32) {
    %c0_i32 = arith.constant 0 : i32
    %c0_i32_0 = arith.constant 0 : i32
    %c0_i32_1 = arith.constant 0 : i32
    %c0_i32_2 = arith.constant 0 : i32
    return %c0_i32, %c0_i32_0, %c0_i32_1 : i32, i32, i32
  }
  func.func @transform_4(%arg0: i32, %arg1: memref<24xi32, #tpu.memory_space<smem>>) -> (i32, i32) {
    %c0_i32 = arith.constant 0 : i32
    %c0_i32_0 = arith.constant 0 : i32
    %c0_i32_1 = arith.constant 0 : i32
    return %c0_i32, %c0_i32_0 : i32, i32
  }
  func.func @transform_5(%arg0: i32, %arg1: memref<24xi32, #tpu.memory_space<smem>>) -> (i32, i32) {
    %c0_i32 = arith.constant 0 : i32
    %c0_i32_0 = arith.constant 0 : i32
    %c0_i32_1 = arith.constant 0 : i32
    return %c0_i32, %c0_i32_0 : i32, i32
  }
  func.func @transform_6(%arg0: i32, %arg1: memref<24xi32, #tpu.memory_space<smem>>) -> (i32, i32) {
    %c0_i32 = arith.constant 0 : i32
    %c0_i32_0 = arith.constant 0 : i32
    %c0_i32_1 = arith.constant 0 : i32
    return %c0_i32, %c0_i32_0 : i32, i32
  }
  func.func @transform_7(%arg0: i32, %arg1: memref<24xi32, #tpu.memory_space<smem>>) -> (i32, i32) {
    %c0_i32 = arith.constant 0 : i32
    %c0_i32_0 = arith.constant 0 : i32
    %c0_i32_1 = arith.constant 0 : i32
    return %c0_i32, %c0_i32_0 : i32, i32
  }
  func.func @transform_8(%arg0: i32, %arg1: memref<24xi32, #tpu.memory_space<smem>>) -> (i32, i32) {
    %c0_i32 = arith.constant 0 : i32
    %c0_i32_0 = arith.constant 0 : i32
    %c0_i32_1 = arith.constant 0 : i32
    return %c0_i32, %c0_i32_0 : i32, i32
  }
  func.func @transform_9(%arg0: i32, %arg1: memref<24xi32, #tpu.memory_space<smem>>) -> (i32, i32) {
    %c0_i32 = arith.constant 0 : i32
    %c0_i32_0 = arith.constant 0 : i32
    %c0_i32_1 = arith.constant 0 : i32
    return %c0_i32, %c0_i32_0 : i32, i32
  }
  func.func @transform_10(%arg0: i32, %arg1: memref<24xi32, #tpu.memory_space<smem>>) -> (i32, i32) {
    %c0_i32 = arith.constant 0 : i32
    %c0_i32_0 = arith.constant 0 : i32
    %c0_i32_1 = arith.constant 0 : i32
    return %c0_i32, %c0_i32_0 : i32, i32
  }
  func.func @transform_11(%arg0: i32, %arg1: memref<24xi32, #tpu.memory_space<smem>>) -> (i32, i32) {
    %c0_i32 = arith.constant 0 : i32
    %c0_i32_0 = arith.constant 0 : i32
    %c0_i32_1 = arith.constant 0 : i32
    return %c0_i32, %c0_i32_0 : i32, i32
  }
  func.func @transform_12(%arg0: i32, %arg1: memref<24xi32, #tpu.memory_space<smem>>) -> (i32, i32) {
    %c0_i32 = arith.constant 0 : i32
    %c0_i32_0 = arith.constant 0 : i32
    %c0_i32_1 = arith.constant 0 : i32
    return %c0_i32, %c0_i32_0 : i32, i32
  }
  func.func @transform_13(%arg0: i32, %arg1: memref<24xi32, #tpu.memory_space<smem>>) -> (i32, i32) {
    %c0_i32 = arith.constant 0 : i32
    %c0_i32_0 = arith.constant 0 : i32
    %c0_i32_1 = arith.constant 0 : i32
    return %c0_i32, %c0_i32_0 : i32, i32
  }
}

</mosaic_0001>

<bundles_post_ra>
// kernel: tree_lstm_fused.1
= control target key start
LH: loop header
LB: loop body
LE: loop exit
PB: predicated region body
PF: predicated region fallthrough
CT: control target
= control target key end

     0   :  { %s1822_s0 = inlined_call_operand.vmem [shape: s32[24], index: 0, kind: input, shape index: {}]   ;;  %s1823_s1 = inlined_call_operand.vmem [shape: f32[3,8,16], index: 1, kind: input, shape index: {}]   ;;  %s1824_s2 = inlined_call_operand.vmem [shape: f32[3,64,16], index: 2, kind: input, shape index: {}]   ;;  %s1825_s3 = inlined_call_operand.vmem [shape: f32[3,8,8], index: 3, kind: input, shape index: {}]   ;;  %s1826_s4 = inlined_call_operand.vmem [shape: f32[3,64,8], index: 4, kind: input, shape index: {}]   ;;  %s1827_s5 = inlined_call_operand.vmem [shape: f32[8,64], index: 5, kind: input, shape index: {}]   ;;  %s1828_s6 = inlined_call_operand.vmem [shape: f32[16,96], index: 6, kind: input, shape index: {}]   ;;  %s1829_s7 = inlined_call_operand.vmem [shape: f32[32,96], index: 7, kind: input, shape index: {}]   ;;  %s1830_s8 = inlined_call_operand.vmem [shape: f32[1,96], index: 8, kind: input, shape index: {}]   ;;  %s1831_s9 = inlined_call_operand.vmem [shape: f32[16,32], index: 9, kind: input, shape index: {}]   ;;  %s1832_s10 = inlined_call_operand.vmem [shape: f32[32,32], index: 10, kind: input, shape index: {}]   ;;  %s1833_s11 = inlined_call_operand.vmem [shape: f32[1,32], index: 11, kind: input, shape index: {}]   ;;  %s1834_s12 = inlined_call_operand.vmem [shape: f32[8,32], index: 12, kind: input, shape index: {}]   ;;  %s1835_s13 = inlined_call_operand.hbm [shape: f32[8,32], index: 13, kind: output, shape index: {0}]   ;;  %s1836_s14 = inlined_call_operand.hbm [shape: f32[8,32], index: 14, kind: output, shape index: {1}]  }
   0x1   :  { %s20_s15 = sshll.u32 %s1822_s0, 4  ;;  %s21_s15 = int_to_ptr.vmem [resolvable:$true] %s20_s15 }
   0x2   :  { %s1415_s16 = scalar_lea.vmem %s21_s15, 16  ;;  %p1420_p1 = scmp.lt.s32.totalorder %s21_s15, %s21_s15 }
   0x3   :  { %p1416_p0 = scmp.ne.s32.totalorder %s21_s15, %s1415_s16  ;;  %p1421_p2 = scmp.lt.s32.totalorder %s1415_s16, %s1415_s16 }
   0x5   :  { %p1422_p3 = por %p1421_p2, %p1420_p1 }
   0x7   :  { %p1423_p4 = pnand %p1422_p3, %p1416_p0 }
   0x9   :  { %1426 = shalt.err (!%p1423_p4)  }
   0xa   :  { %s1485_s17 = smov [#allocation3]  }
   0xb   :  { %23 = dma.vmem_to_smem %s21_s15, 16, %s1485_s17, [#allocation2] }
   0xc   :  { %1475 = dma.done.wait [#allocation2], 16 }
   0xd   :  { %1476 = vsyncadd [#allocation2], 4294967280 }
   0xe   :  { %25 = sfence }
   0xf   :  { %26 = vsyncpa [#allocation5], 0 }
  0x10   :  { %27 = vsyncpa [#allocation7], 0  ;;  %v52_v0 = vld [vmem:[%s1834_s12] sm:$0xff]  ;;  %vm53_vm0 = vcmask 261120   ;;  %v1486_v1 = vmov 0.0   ;;  %s1578_s0 = smov 0  }
  0x11   :  { %54 = vst.msk [vmem:[#allocation4] sm:$0xff] %vm53_vm0, %v52_v0  ;;  %55 = vst.msk [vmem:[#allocation6] sm:$0xff] %vm53_vm0, %v1486_v1 }
  0x12 LB: > { %v1487_v4 = vmov 0.0   ;;  %vm1488_vm1 = vmmov 0   ;;  %s1587_s12 = sshll.u32 %s1483_s0, 3  ;;  %vm88_vm2 = vcmask 64512   ;;  %s1103_s23 = sshll.u32 %s1483_s0, 6  ;;  %v398_v5 = vld [vmem:[%s1829_s7] sm:$0xff]  ;;  %s1483_s0 = sphi %s1578_s0, %s61_s0  }
  0x13   : > { %1210 = vmatprep.subr.mxu0 %v1487_v4  ;;  %1212 = vmatprep.mubr.msk.f32.mxu0 %vm1488_vm1, %v1487_v4  ;;  %s75_s22 = scalar_lea.vmem %s1825_s3, %s1587_s12  ;;  %v399_v6 = vld [vmem:[%s1829_s7 + $0x8] sm:$0xff]  ;;  %v1489_v8 = vmov 0.0|0.0   ;;  %v396_v9 = vld [vmem:[%s1828_s6] sm:$0xff]  ;;  %s1613_s18 = scalar_lea.vmem %s1826_s4, %s1103_s23  ;;  %v400_v16 = vld [vmem:[%s1829_s7 + $0x10] sm:$0xff]  ;;  %vm475_vm3 = vcmask 130048   ;;  %vm900_vm4 = vcmask 523264  }
  0x14   : > { %v76_v7 = vld [vmem:[%s75_s22] sm:$0xff]  ;;  %v397_v10 = vld [vmem:[%s1828_s6 + $0x8] sm:$0xff]  ;;  %v1317_v11 = vpack.c.bf16 %v399_v6, %v398_v5  ;;  %v80_v14 = vld [vmem:[%s1613_s18 + $0x10] sm:$0xff]  ;;  %s63_s30 = scalar_lea.vmem %s1823_s1, %s1587_s12  ;;  %s66_s21 = scalar_lea.vmem %s1824_s2, %s1103_s23  ;;  %vm992_vm5 = vcmask 253952   ;;  %vm999_vm6 = vcmask 254977   ;;  %vm1006_vm7 = vcmask 256002  }
  0x15   : > { %v78_v12 = vld [vmem:[%s1613_s18] sm:$0xff]  ;;  %v79_v13 = vld [vmem:[%s1613_s18 + $0x8] sm:$0xff]  ;;  %v1323_v15 = vpack.c.bf16 %v397_v10, %v396_v9  ;;  %v401_v17 = vld [vmem:[%s1829_s7 + $0x18] sm:$0xff]  ;;  %s996_s17 = sadd.s32 1, %s1587_s12  ;;  %s1742_s19 = sld [smem:[#allocation3 + %s1587_s12]]  ;;  %vm1013_vm8 = vcmask 257027  }
  0x16   : > { %1217 = vmatprep.mubr.msk.f32.mxu1 %vm88_vm2, %v78_v12  ;;  %v81_v18 = vld [vmem:[%s1613_s18 + $0x18] sm:$0xff]  ;;  %v82_v19 = vld [vmem:[%s1613_s18 + $0x20] sm:$0xff]  ;;  %v1320_v20 = vpack.c.bf16 %v401_v17, %v400_v16  ;;  %v83_v21 = vld [vmem:[%s1613_s18 + $0x28] sm:$0xff]  ;;  %s1010_s20 = sadd.s32 3, %s1587_s12  ;;  %s1017_s23 = sadd.s32 4, %s1587_s12  ;;  %vm1020_vm9 = vcmask 258052  }
  0x17   : > { %v84_v22 = vld [vmem:[%s1613_s18 + $0x30] sm:$0xff]  ;;  %v85_v23 = vld [vmem:[%s1613_s18 + $0x38] sm:$0xff]  ;;  %v564_v24 = vld [vmem:[%s1832_s10] sm:$0xff]  ;;  %s1003_s18 = sadd.s32 2, %s1587_s12  ;;  %s1024_s24 = sadd.s32 5, %s1587_s12  ;;  %vm1027_vm10 = vcmask 259077  }
  0x18   : > { %v86_v2 = vld [vmem:[#allocation4] sm:$0xff]  ;;  %v87_v3 = vld [vmem:[#allocation6] sm:$0xff]  ;;  %v69_v33 = vld [vmem:[%s66_s21 + $0x10] sm:$0xff]  ;;  %s1748_s22 = sld [smem:[#allocation3 + %s1003_s18]]  ;;  %s1031_s25 = sadd.s32 6, %s1587_s12  ;;  %vm1034_vm11 = vcmask 260102  }
  0x19   : > { %1211 = vmatpush3.msra.mxu0 %v86_v2  ;;  %1215 = vmatprep.subr.mxu1 %v86_v2  ;;  %v565_v25 = vld [vmem:[%s1832_s10 + $0x8] sm:$0xff]  ;;  %v64_v27 = vld [vmem:[%s63_s30] sm:$0xff]  ;;  %v70_v34 = vld [vmem:[%s66_s21 + $0x18] sm:$0xff]  ;;  %s1490_s30 = smov 64   ;;  %s1752_s26 = sld [smem:[#allocation3 + %s1010_s20]]  ;;  %vm1041_vm12 = vcmask 261127  }
  0x1a   : > { %1216 = vmatpush3.msra.mxu1 %v86_v2  ;;  %1229 = vmatprep.subr.mxu0 %v87_v3  ;;  %v1329_v26 = vpack.c.bf16 %v565_v25, %v564_v24  ;;  %v568_v28 = vld [vmem:[%s1831_s9] sm:$0xff]  ;;  %v569_v29 = vld [vmem:[%s1831_s9 + $0x8] sm:$0xff]  ;;  %v73_v37 = vld [vmem:[%s66_s21 + $0x30] sm:$0xff]  ;;  %s1038_s27 = sadd.s32 7, %s1587_s12  ;;  %s1755_s28 = sld [smem:[#allocation3 + %s1017_s23]] }
  0x1b   : > { %1316 = vmatprep.subr.bf16.mxu1 %v1489_v8  ;;  %1213 = vmatmul.mubr.msk.f32.vlgmr.msra.gmra.mrb[0].mxu0 %vm88_vm2, %v76_v7  ;;  %v1325_v30 = vpack.c.bf16 %v569_v29, %v568_v28  ;;  %v67_v31 = vld [vmem:[%s66_s21] sm:$0xff]  ;;  %v68_v32 = vld [vmem:[%s66_s21 + $0x8] sm:$0xff]  ;;  %v74_v38 = vld [vmem:[%s66_s21 + $0x38] sm:$0xff]  ;;  %s1757_s29 = sld [smem:[#allocation3 + %s1024_s24]]  ;;  %s994_s12 = scalar_lea.vmem [#allocation6], %s1742_s19 }
  0x1c   : > { %1230 = vmatpush3.msra.mxu0 %v87_v3  ;;  %1231 = vmatprep.mubr.msk.f32.mxu0 %vm88_vm2, %v78_v12  ;;  %v71_v35 = vld [vmem:[%s66_s21 + $0x20] sm:$0xff]  ;;  %v72_v36 = vld [vmem:[%s66_s21 + $0x28] sm:$0xff]  ;;  %v566_v39 = vld [vmem:[%s1832_s10 + $0x10] sm:$0xff]  ;;  %s1745_s21 = sld [smem:[#allocation3 + %s996_s17]]  ;;  %s61_s0 = sadd.s32 1, %s1483_s0  }
  0x1d   : > { %1322 = vmatprep.subr.bf16.mxu0 %v1489_v8  ;;  %1218 = vmatmul.mubr.msk.f32.vlgmr.msra.gmra.mrb[0].mxu1 %vm88_vm2, %v79_v13  ;;  %v567_v40 = vld [vmem:[%s1832_s10 + $0x18] sm:$0xff]  ;;  %v1123_v7 = vld [vmem:[%s1830_s8] ss:$0 sm:$0xff]  ;;  %s1761_s15 = sld [smem:[#allocation3 + %s1038_s27]]  ;;  %s1491_s27 = smov 32  }
  0x1e   : > { %1220 = vmatprep.mubr.msk.f32.mxu1 %vm88_vm2, %v80_v14  ;;  %1318 = vmatpush3.bf16.msra.mxu1 %v1317_v11  ;;  %v1333_v41 = vpack.c.bf16 %v567_v40, %v566_v39  ;;  %s1008_s17 = scalar_lea.vmem [#allocation6], %s1748_s22  ;;  %p58_p5 = scmp.ge.s32.totalorder %s61_s0, 3  }
  0x1f   : > { %1232 = vmatmul.mubr.msk.f32.vlgmr.msra.gmra.mrb[2].mxu0 %vm88_vm2, %v79_v13  ;;  %1319 = vmatprep.subr.bf16.mxu1 %v1489_v8  ;;  %v1141_v13 = vld [vmem:[%s1833_s11] ss:$0 sm:$0xff]  ;;  %s1015_s18 = scalar_lea.vmem [#allocation6], %s1752_s26 }
  0x20   : > { %1234 = vmatprep.mubr.msk.f32.mxu0 %vm88_vm2, %v80_v14  ;;  %1324 = vmatpush3.bf16.msra.mxu0 %v1323_v15  ;;  %s1022_s20 = scalar_lea.vmem [#allocation6], %s1755_s28 }
  0x21   : > { %1221 = vmatmul.mubr.msk.f32.gmra.mrb[2].mxu1 %vm88_vm2, %v81_v18  ;;  %1326 = vmatprep.subr.bf16.mxu0 %v1325_v30  ;;  %s1029_s23 = scalar_lea.vmem [#allocation6], %s1757_s29 }
  0x22   : > { %1223 = vmatprep.mubr.msk.f32.mxu1 %vm88_vm2, %v82_v19  ;;  %1321 = vmatpush3.bf16.msra.mxu1 %v1320_v20  ;;  %s1001_s16 = scalar_lea.vmem [#allocation6], %s1745_s21 }
  0x23   : > { %1235 = vmatmul.mubr.msk.f32.gmra.mrb[4].mxu0 %vm88_vm2, %v81_v18  ;;  %1330 = vmatprep.subr.bf16.mxu1 %v1329_v26 }
  0x24   : > { %1237 = vmatprep.mubr.msk.f32.mxu0 %vm88_vm2, %v82_v19 }
  0x25   : > { %1224 = vmatmul.mubr.msk.f32.gmra.mrb[4].mxu1 %vm88_vm2, %v83_v21 }
  0x26   : > { %1226 = vmatprep.mubr.msk.f32.mxu1 %vm88_vm2, %v84_v22 }
  0x27   : > { %1238 = vmatmul.mubr.msk.f32.gmra.mrb[6].mxu0 %vm88_vm2, %v83_v21 }
  0x28   : > { %1240 = vmatprep.mubr.msk.f32.mxu0 %vm88_vm2, %v84_v22 }
  0x29   : > { %1227 = vmatmul.mubr.msk.f32.gmra.mrb[6].mxu1 %vm88_vm2, %v85_v23 }
  0x2a   : > { %1251 = vmatprep.mubr.msk.f32.mxu1 %vm1488_vm1, %v1487_v4 }
  0x2b   : > { %1241 = vmatmul.mubr.msk.f32.gmra.mrb[8].mxu0 %vm88_vm2, %v85_v23 }
  0x2c   : > { %1258 = vmatprep.mubr.msk.f32.mxu0 %vm1488_vm1, %v1487_v4 }
  0x2f   : > { %1259 = vmatmul.mubr.msk.f32.vlgmr.msra.gmra.mrb[10].mxu0 %vm475_vm3, %v64_v27 }
  0x30   : > { %1328 = vmatpush3.bf16.msra.mxu0 %v1325_v30  ;;  %1265 = vmatprep.mubr.msk.f32.mxu0 %vm475_vm3, %v67_v31 }
  0x31   : > { %1337 = vmatprep.subr.bf16.mxu0 %v1489_v8 }
  0x33   : > { %1266 = vmatmul.mubr.msk.f32.vlgmr.msra.gmra.mrb[12].mxu0 %vm475_vm3, %v68_v32 }
  0x34   : > { %1268 = vmatprep.mubr.msk.f32.mxu0 %vm475_vm3, %v69_v33 }
  0x37   : > { %1269 = vmatmul.mubr.msk.f32.gmra.mrb[14].mxu0 %vm475_vm3, %v70_v34 }
  0x38   : > { %1271 = vmatprep.mubr.msk.f32.mxu0 %vm475_vm3, %v71_v35 }
  0x3b   : > { %1272 = vmatmul.mubr.msk.f32.gmra.mrb[16].mxu0 %vm475_vm3, %v72_v36 }
  0x3c   : > { %1274 = vmatprep.mubr.msk.f32.mxu0 %vm475_vm3, %v73_v37 }
  0x3f   : > { %1275 = vmatmul.mubr.msk.f32.gmra.mrb[18].mxu0 %vm475_vm3, %v74_v38 }
  0x40   : > { %1313 = vmatprep.mubr.msk.f32.mxu0 %vm1488_vm1, %v1487_v4 }
  0xee   : > { %v158_v42 = vpop.f32.mrb[0].mxu0 }
  0xef   : > { %v1214_v43 = vpop.f32.mrb[1].mxu0  ;;  %1252 = vmatmul.mubr.msk.f32.vlgmr.msra.gmra.mrb[8].mxu1 %vm53_vm0, %v158_v42 }
  0xf0   : > { %1332 = vmatpush3.bf16.msra.mxu1 %v1329_v26  ;;  %v1219_v44 = vpop.f32.mrb[0].mxu1 }
  0xf1   : > { %1334 = vmatprep.subr.bf16.mxu1 %v1333_v41  ;;  %v252_v46 = vpop.f32.mrb[1].mxu1 }
  0xf2   : > { %v1691_v45 = vpop.f32.mrb[2].mxu0  ;;  %1285 = vmatprep.mubr.msk.f32.mxu1 %vm53_vm0, %v252_v46 }
  0xf3   : > { %v1693_v47 = vpop.f32.mrb[3].mxu0 }
  0xf4   : > { %1336 = vmatpush3.bf16.msra.mxu1 %v1333_v41  ;;  %v1222_v48 = vpop.f32.mrb[2].mxu1 }
  0xf5   : > { %v262_v50 = vpop.f32.mrb[3].mxu1 }
  0xf6   : > { %v1696_v49 = vpop.f32.mrb[4].mxu0 }
  0xf7   : > { %1286 = vmatmul.mubr.msk.f32.vlgmr.msra.gmra.mrb[10].mxu1 %vm53_vm0, %v1219_v44  ;;  %v1699_v51 = vpop.f32.mrb[5].mxu0 }
  0xf8   : > { %1288 = vmatprep.mubr.msk.f32.mxu1 %vm53_vm0, %v262_v50  ;;  %v1225_v52 = vpop.f32.mrb[4].mxu1 }
  0xf9   : > { %v272_v54 = vpop.f32.mrb[5].mxu1 }
  0xfa   : > { %v1702_v53 = vpop.f32.mrb[6].mxu0 }
  0xfb   : > { %1289 = vmatmul.mubr.msk.f32.gmra.mrb[12].mxu1 %vm53_vm0, %v1222_v48  ;;  %v1705_v55 = vpop.f32.mrb[7].mxu0 }
  0xfc   : > { %1291 = vmatprep.mubr.msk.f32.mxu1 %vm53_vm0, %v272_v54  ;;  %v1228_v56 = vpop.f32.mrb[6].mxu1 }
  0xfd   : > { %v282_v58 = vpop.f32.mrb[7].mxu1 }
  0xfe   : > { %v1708_v57 = vpop.f32.mrb[8].mxu0 }
  0xff   : > { %1292 = vmatmul.mubr.msk.f32.gmra.mrb[14].mxu1 %vm53_vm0, %v1225_v52  ;;  %v1711_v59 = vpop.f32.mrb[9].mxu0 }
 0x100   : > { %1294 = vmatprep.mubr.msk.f32.mxu1 %vm53_vm0, %v282_v58 }
 0x102   : > { %v545_v60 = vpop.f32.mrb[10].mxu0 }
 0x103   : > { %1295 = vmatmul.mubr.msk.f32.gmra.mrb[16].mxu1 %vm53_vm0, %v1228_v56  ;;  %v1260_v61 = vpop.f32.mrb[11].mxu0 }
 0x106   : > { %v1267_v62 = vpop.f32.mrb[12].mxu0 }
 0x107   : > { %v660_v63 = vpop.f32.mrb[13].mxu0 }
 0x10a   : > { %v1270_v0 = vpop.f32.mrb[14].mxu0 }
 0x10b   : > { %v670_v1 = vpop.f32.mrb[15].mxu0 }
 0x10e   : > { %v1273_v2 = vpop.f32.mrb[16].mxu0 }
 0x10f   : > { %v680_v3 = vpop.f32.mrb[17].mxu0 }
 0x112   : > { %v1276_v4 = vpop.f32.mrb[18].mxu0 }
 0x113   : > { %v690_v5 = vpop.f32.mrb[19].mxu0 }
 0x1c2   : > { %v471_v6 = vpop.f32.mrb[8].mxu1 }
 0x1c3   : > { %v546_v9 = vadd.f32 %v545_v60, %v471_v6  ;;  %v1253_v10 = vpop.f32.mrb[9].mxu1 }
 0x1c5   : > { %v1718_v11 = vadd.f32 %v1123_v7, %v546_v9 }
 0x1c7   : > { %1375 = vtanh.f32 %v1718_v11 }
 0x1ca   : > { %v1287_v12 = vpop.f32.mrb[10].mxu1 }
 0x1cb   : > { %v795_v14 = vadd.f32 %v1287_v12, %v1267_v62  ;;  %v789_v15 = vpop.f32.mrb[11].mxu1 }
 0x1cc   : > { %v790_v16 = vadd.f32 %v789_v15, %v660_v63 }
 0x1cd   : > { %v836_v17 = vadd.f32 %v1141_v13, %v795_v14 }
 0x1ce   : > { %v835_v18 = vadd.f32 %v1141_v13, %v790_v16  ;;  %v1290_v19 = vpop.f32.mrb[12].mxu1 }
 0x1cf   : > { %v1143_v20 = vmul.f32 -1.442695, %v836_v17  ;;  %v805_v21 = vadd.f32 %v1290_v19, %v1270_v0  ;;  %v799_v22 = vpop.f32.mrb[13].mxu1 }
 0x1d0   : > { %v1142_v23 = vmul.f32 -1.442695, %v835_v18  ;;  %v800_v24 = vadd.f32 %v799_v22, %v670_v1 }
 0x1d1   : > { %v1376_v25 = vpop.eup %1375  ;;  %1377 = vpow2.f32 %v1143_v20  ;;  %v838_v26 = vadd.f32 %v1141_v13, %v805_v21 }
 0x1d2   : > { %1379 = vpow2.f32 %v1142_v23  ;;  %v837_v27 = vadd.f32 %v1141_v13, %v800_v24  ;;  %v1293_v28 = vpop.f32.mrb[14].mxu1  ;;  %975 = vrot.lane.b32.xlu0 %v1376_v25, %s1490_s30  ;;  %s1759_s30 = sld [smem:[#allocation3 + %s1031_s25]]  ;;  %s1043_s25 = scalar_lea.vmem [#allocation6], %s1761_s15 }
 0x1d3   : > { %v1145_v29 = vmul.f32 -1.442695, %v838_v26  ;;  %v815_v30 = vadd.f32 %v1293_v28, %v1273_v2  ;;  %v809_v31 = vpop.f32.mrb[15].mxu1 }
 0x1d4   : > { %v1144_v32 = vmul.f32 -1.442695, %v837_v27  ;;  %v810_v33 = vadd.f32 %v809_v31, %v680_v3 }
 0x1d5   : > { %1381 = vpow2.f32 %v1145_v29  ;;  %v840_v34 = vadd.f32 %v1141_v13, %v815_v30 }
 0x1d6   : > { %v839_v35 = vadd.f32 %v1141_v13, %v810_v33  ;;  %v1296_v36 = vpop.f32.mrb[16].mxu1  ;;  %1383 = vpow2.f32 %v1144_v32 }
 0x1d7   : > { %v1147_v37 = vmul.f32 -1.442695, %v840_v34  ;;  %v825_v38 = vadd.f32 %v1296_v36, %v1276_v4  ;;  %v819_v39 = vpop.f32.mrb[17].mxu1 }
 0x1d8   : > { %v1146_v40 = vmul.f32 -1.442695, %v839_v35  ;;  %v820_v41 = vadd.f32 %v819_v39, %v690_v5  ;;  %s1036_s24 = scalar_lea.vmem [#allocation6], %s1759_s30 }
 0x1d9   : > { %1385 = vpow2.f32 %v1147_v37  ;;  %v842_v42 = vadd.f32 %v1141_v13, %v825_v38 }
 0x1da   : > { %1387 = vpow2.f32 %v1146_v40  ;;  %v841_v43 = vadd.f32 %v1141_v13, %v820_v41 }
 0x1db   : > { %v1378_v44 = vpop.eup %1377  ;;  %v1149_v46 = vmul.f32 -1.442695, %v842_v42 }
 0x1dc   : > { %v1380_v48 = vpop.eup %1379  ;;  %v868_v50 = vadd.f32 1.0, %v1378_v44  ;;  %v1148_v52 = vmul.f32 -1.442695, %v841_v43 }
 0x1dd   : > { %v867_v54 = vadd.f32 1.0, %v1380_v48  ;;  %1389 = vpow2.f32 %v1149_v46 }
 0x1de   : > { %1391 = vrcp.f32 %v868_v50 }
 0x1df   : > { %v1382_v56 = vpop.eup %1381  ;;  %1393 = vrcp.f32 %v867_v54 }
 0x1e0   : > { %v870_v58 = vadd.f32 1.0, %v1382_v56  ;;  %1395 = vpow2.f32 %v1148_v52  ;;  %v1384_v60 = vpop.eup %1383 }
 0x1e1   : > { %v869_v61 = vadd.f32 1.0, %v1384_v60 }
 0x1e2   : > { %1397 = vrcp.f32 %v870_v58 }
 0x1e3   : > { %v1386_v62 = vpop.eup %1385  ;;  %1399 = vrcp.f32 %v869_v61 }
 0x1e4   : > { %v1388_v63 = vpop.eup %1387  ;;  %v872_v0 = vadd.f32 1.0, %v1386_v62 }
 0x1e5   : > { %v871_v1 = vadd.f32 1.0, %v1388_v63 }
 0x1e6   : > { %1401 = vrcp.f32 %v872_v0 }
 0x1e7   : > { %v1390_v2 = vpop.eup %1389  ;;  %1403 = vrcp.f32 %v871_v1 }
 0x1e8   : > { %v1392_v3 = vpop.eup %1391  ;;  %v874_v4 = vadd.f32 1.0, %v1390_v2 }
 0x1e9   : > { %v1394_v5 = vpop.eup %1393  ;;  %v893_v6 = vmul.f32 %v1392_v3, %v1691_v45 }
 0x1ea   : > { %v1396_v7 = vpop.eup %1395  ;;  %1405 = vrcp.f32 %v874_v4  ;;  %v892_v9 = vmul.f32 %v1394_v5, %v1693_v47 }
 0x1eb   : > { %v873_v10 = vadd.f32 1.0, %v1396_v7 }
 0x1ec   : > { %v1398_v12 = vpop.eup %1397  ;;  %v1338_v13 = vpack.c.bf16 %v893_v6, %v892_v9 }
 0x1ed   : > { %1407 = vrcp.f32 %v873_v10  ;;  %v895_v14 = vmul.f32 %v1398_v12, %v1696_v49  ;;  %v1400_v15 = vpop.eup %1399 }
 0x1ee   : > { %1339 = vmatpush3.bf16.msra.mxu0 %v1338_v13  ;;  %v894_v16 = vmul.f32 %v1400_v15, %v1699_v51 }
 0x1ef   : > { %1340 = vmatprep.subr.bf16.mxu0 %v1489_v8 }
 0x1f0   : > { %v1402_v17 = vpop.eup %1401  ;;  %v1341_v19 = vpack.c.bf16 %v895_v14, %v894_v16 }
 0x1f1   : > { %v1404_v18 = vpop.eup %1403  ;;  %v897_v45 = vmul.f32 %v1402_v17, %v1702_v53 }
 0x1f2   : > { %v896_v20 = vmul.f32 %v1404_v18, %v1705_v55  ;;  %1342 = vmatpush3.bf16.msra.mxu0 %v1341_v19  ;;  %v891_v55 = vld [vmem:[%s1827_s5] sm:$0xff] }
 0x1f3   : > { %1343 = vmatprep.subr.bf16.mxu0 %v1489_v8 }
 0x1f4   : > { %v1406_v47 = vpop.eup %1405  ;;  %v1344_v21 = vpack.c.bf16 %v897_v45, %v896_v20 }
 0x1f5   : > { %v899_v49 = vmul.f32 %v1406_v47, %v1708_v57  ;;  %v1124_v57 = vmul.f32 -1.442695, %v1718_v11 }
 0x1f6   : > { %1345 = vmatpush3.bf16.msra.mxu0 %v1344_v21 }
 0x1f7   : > { %v1408_v22 = vpop.eup %1407  ;;  %1346 = vmatprep.subr.bf16.mxu0 %v1489_v8  ;;  %1409 = vpow2.f32 %v1124_v57 }
 0x1f8   : > { %v898_v51 = vmul.f32 %v1408_v22, %v1711_v59 }
 0x1fa   : > { %v1347_v53 = vpack.c.bf16 %v899_v49, %v898_v51 }
 0x1fc   : > { %1348 = vmatpush3.bf16.msra.mxu0 %v1347_v53 }
 0x1ff   : > { %1314 = vmatmul.mubr.msk.f32.vlgmr.msra.gmra.mrb[20].mxu0 %vm900_vm4, %v891_v55 }
 0x201   : > { %v1410_v23 = vpop.eup %1409 }
 0x202   : > { %v560_v24 = vadd.f32 1.0, %v1410_v23 }
 0x204   : > { %1411 = vrcp.f32 %v560_v24 }
 0x20e   : > { %v1412_v59 = vpop.eup %1411 }
 0x244   : > { %v976_v8 = vpop.permute.xlu0 %975 }
 0x245   : > { %v978_v11 = vmul.f32 %v1412_v59, %v976_v8 }
 0x2d2   : > { %v970_v25 = vpop.f32.mrb[20].mxu0 }
 0x2d3   : > { %v979_v26 = vadd.f32 %v978_v11, %v970_v25  ;;  %v1315_v27 = vpop.f32.mrb[21].mxu0 }
 0x2d5   : > { %1413 = vtanh.f32 %v979_v26  ;;  %995 = vst.msk [vmem:[%s994_s12] sm:$0x1] %vm992_vm5, %v979_v26  ;;  %s1492_s12 = smov 96  }
 0x2d6   : > { %1002 = vst.msk [vmem:[%s1001_s16 - $0x1] sm:$0x2] %vm999_vm6, %v979_v26  ;;  %s991_s16 = scalar_lea.vmem [#allocation4], %s1742_s19  ;;  %s1040_s19 = scalar_lea.vmem [#allocation4], %s1761_s15 }
 0x2d7   : > { %1009 = vst.msk [vmem:[%s1008_s17 - $0x2] sm:$0x4] %vm1006_vm7, %v979_v26  ;;  %s998_s17 = scalar_lea.vmem [#allocation4], %s1745_s21  ;;  %s1493_s21 = smov (%p58_p5), [#allocation4]  }
 0x2d8   : > { %1016 = vst.msk [vmem:[%s1015_s18 - $0x3] sm:$0x8] %vm1013_vm8, %v979_v26  ;;  %s1005_s18 = scalar_lea.vmem [#allocation4], %s1748_s22  ;;  %s1051_s22 = sshll.u32 (%p58_p5), %s1493_s21, 4  ;;  %s1052_s22 = int_to_ptr.vmem [resolvable:$true] %s1051_s22 }
 0x2d9   : > { %1023 = vst.msk [vmem:[%s1022_s20 - $0x4] sm:$0x10] %vm1020_vm9, %v979_v26  ;;  %s1012_s20 = scalar_lea.vmem [#allocation4], %s1752_s26  ;;  %s1494_s26 = smov (%p58_p5), [#allocation6]  }
 0x2da   : > { %1030 = vst.msk [vmem:[%s1029_s23 - $0x5] sm:$0x20] %vm1027_vm10, %v979_v26  ;;  %s1019_s23 = scalar_lea.vmem [#allocation4], %s1755_s28  ;;  %s1061_s28 = sshll.u32 (%p58_p5), %s1494_s26, 4  ;;  %s1062_s28 = int_to_ptr.vmem [resolvable:$true] %s1061_s28 }
 0x2db   : > { %1037 = vst.msk [vmem:[%s1036_s24 - $0x6] sm:$0x40] %vm1034_vm11, %v979_v26  ;;  %s1026_s24 = scalar_lea.vmem [#allocation4], %s1757_s29  ;;  %s1427_s29 = scalar_lea.vmem (%p58_p5), %s1052_s22, 128 }
 0x2dc   : > { %1044 = vst.msk [vmem:[%s1043_s25 - $0x7] sm:$0x80] %vm1041_vm12, %v979_v26  ;;  %s1033_s25 = scalar_lea.vmem [#allocation4], %s1759_s30  ;;  %p1428_p6 = scmp.ne.s32.totalorder (%p58_p5), %s1052_s22, %s1427_s29 }
 0x2dd   :  { %p1432_p7 = scmp.lt.s32.totalorder (%p58_p5), %s1052_s22, %s1052_s22  ;;  %p1433_p8 = scmp.lt.s32.totalorder (%p58_p5), %s1427_s29, %s1427_s29 }
 0x2df   : > { %v1414_v28 = vpop.eup %1413  ;;  %p1434_p9 = por (%p58_p5), %p1433_p8, %p1432_p7 }
 0x2e0   : > { %982 = vrot.lane.b32.xlu0 %v1414_v28, %s1491_s27 }
 0x2e1   :  { %p1435_p10 = pnand (%p58_p5), %p1434_p9, %p1428_p6 }
 0x352   : > { %v983_v29 = vpop.permute.xlu0 %982 }
 0x353   : > { %v985_v30 = vmul.f32 %v1412_v59, %v983_v29 }
 0x355   : > { %988 = vrot.lane.b32.xlu1 %v985_v30, %s1492_s12 }
 0x3c7   : > { %v989_v31 = vpop.permute.xlu1 %988 }
 0x3c8   : > { %993 = vst.msk [vmem:[%s991_s16] sm:$0x1] %vm992_vm5, %v989_v31 }
 0x3c9   : > { %1000 = vst.msk [vmem:[%s998_s17 - $0x1] sm:$0x2] %vm999_vm6, %v989_v31  ;;  %60 = sbr.rel (!%p58_p5) target bundleno = 18 (0x12), region = 103 }
 0x3ca   : > { %1007 = vst.msk [vmem:[%s1005_s18 - $0x2] sm:$0x4] %vm1006_vm7, %v989_v31 }
 0x3cb   : > { %1014 = vst.msk [vmem:[%s1012_s20 - $0x3] sm:$0x8] %vm1013_vm8, %v989_v31 }
 0x3cc   : > { %1021 = vst.msk [vmem:[%s1019_s23 - $0x4] sm:$0x10] %vm1020_vm9, %v989_v31 }
 0x3cd   : > { %1028 = vst.msk [vmem:[%s1026_s24 - $0x5] sm:$0x20] %vm1027_vm10, %v989_v31 }
 0x3ce   : > { %1035 = vst.msk [vmem:[%s1033_s25 - $0x6] sm:$0x40] %vm1034_vm11, %v989_v31 }
 0x3cf   : > { %1042 = vst.msk [vmem:[%s1040_s19 - $0x7] sm:$0x80] %vm1041_vm12, %v989_v31 }
 0x3d0   :  { %1438 = shalt.err (!%p1435_p10)
}
 0x3d1   :  { %s1439_s27 = scalar_lea.hbm %s1835_s13, 128 }
 0x3d2   :  { %p1440_p11 = scmp.ne.s32.totalorder %s1835_s13, %s1439_s27  ;;  %p1443_p12 = scmp.lt.u32.totalorder %s1439_s27, %s1835_s13 }
 0x3d4   :  { %p1445_p13 = pnand %p1443_p12, %p1440_p11 }
 0x3d6   :  { %1448 = shalt.err (!%p1445_p13)
}
 0x3d7   :  { %1054 = dma.vmem_to_hbm [thread:$0]  %s1052_s22, 128, %s1835_s13, [#allocation5]  }
 0x3d8   :  { %s1449_s5 = scalar_lea.vmem %s1062_s28, 128  ;;  %p1454_p1 = scmp.lt.s32.totalorder %s1062_s28, %s1062_s28 }
 0x3d9   :  { %p1450_p0 = scmp.ne.s32.totalorder %s1062_s28, %s1449_s5  ;;  %p1455_p2 = scmp.lt.s32.totalorder %s1449_s5, %s1449_s5 }
 0x3db   :  { %p1456_p3 = por %p1455_p2, %p1454_p1 }
 0x3dd   :  { %p1457_p4 = pnand %p1456_p3, %p1450_p0 }
 0x3df   :  { %1460 = shalt.err (!%p1457_p4)
}
 0x3e0   :  { %s1461_s8 = scalar_lea.hbm %s1836_s14, 128 }
 0x3e1   :  { %p1462_p5 = scmp.ne.s32.totalorder %s1836_s14, %s1461_s8  ;;  %p1465_p6 = scmp.lt.u32.totalorder %s1461_s8, %s1836_s14 }
 0x3e3   :  { %p1467_p7 = pnand %p1465_p6, %p1462_p5 }
 0x3e5   :  { %1470 = shalt.err (!%p1467_p7)
}
 0x3e6   :  { %1064 = dma.vmem_to_hbm [thread:$0]  %s1062_s28, 128, %s1836_s14, [#allocation7]  }
 0x3e7   :  { %1477 = dma.done.wait [#allocation5], 128  }
 0x3e8   :  { %1478 = vsyncadd [#allocation5], 4294967168 }
 0x3e9   :  { %1479 = dma.done.wait [#allocation7], 128  }
 0x3ea   :  { %1480 = vsyncadd [#allocation7], 4294967168 }
 0x3eb   :  { %1071 = vsyncpa [#allocation5], 1 }
 0x3ec   :  { %1072 = vsyncpa [#allocation7], 1 }

</bundles_post_ra>
